<compile_context>
chip_gen: v7x
topology: tpu7x:2x2x1
jax: 0.10.0
libtpu: 0.0.40
codegen_flags: <defaults>
</compile_context>

<pallas_src>
import functools

import jax
import jax.numpy as jnp
from jax.experimental import pallas as pl
from jax.experimental.pallas import tpu as pltpu


_SQRT2_INV = 0.7071067811865476


def _gelu_exact(x):
    # nn.GELU() default == exact (erf) formulation
    return 0.5 * x * (1.0 + jax.lax.erf(x * jnp.asarray(_SQRT2_INV, x.dtype)))


def _round_up(x, m):
    return (x + m - 1) // m * m


def _vmem_limit_bytes():
    # Per-generation VMEM request: v5e/v6e have 128 MiB physical, v7x only 64 MiB.
    # Ask for ~85% and leave headroom for compiler-internal scratch / descriptors.
    try:
        cap = int(pltpu.get_tpu_info().vmem_capacity_bytes)
        return max(32 * 1024 * 1024, int(0.85 * cap))
    except Exception:
        return 48 * 1024 * 1024  # safe on every generation


# --------------------------------------------------------------------------
# Kernels
# --------------------------------------------------------------------------

def _mlp_norm_kernel(x_ref, w1_ref, b1_ref, w2_ref, b2_ref, w3_ref, b3_ref,
                     z_ref, *, compute_dtype):
    """3-layer MLP (GELU) + L2 row-normalization for one batch tile.

    Weights are pre-transposed (in, out) so the MXU is fed directly; matmul
    operands are compute_dtype (bf16 by default), accumulation is f32, and all
    elementwise math (GELU, rsqrt) stays in f32 (v5e has no bf16 VPU/EUP).
    """
    x = x_ref[...].astype(compute_dtype)
    h = jnp.dot(x, w1_ref[...], preferred_element_type=jnp.float32) + b1_ref[...]
    h = _gelu_exact(h)
    h = jnp.dot(h.astype(compute_dtype), w2_ref[...],
                preferred_element_type=jnp.float32) + b2_ref[...]
    h = _gelu_exact(h)
    h = jnp.dot(h.astype(compute_dtype), w3_ref[...],
                preferred_element_type=jnp.float32) + b3_ref[...]
    # F.normalize(x, dim=-1, p=2): x / max(||x||, 1e-12) == x * rsqrt(max(ssq, 1e-24))
    ssq = jnp.sum(h * h, axis=-1, keepdims=True)
    z_ref[...] = (h * jax.lax.rsqrt(jnp.maximum(ssq, 1e-24))).astype(z_ref.dtype)


def _last_layer_kernel(z_ref, wl_ref, o_ref):
    """Weight-normalized last layer (weight_g == 1, no bias).

    wl is already v / ||v||_row, transposed to (bottleneck, out_tile); its block
    index only depends on the OUTER grid axis, so it streams from HBM once.
    """
    o_ref[...] = jnp.dot(z_ref[...], wl_ref[...],
                         preferred_element_type=jnp.float32).astype(o_ref.dtype)


# --------------------------------------------------------------------------
# Wrapper
# --------------------------------------------------------------------------

def prepare_params(params, *, block_out=4096, compute_dtype=jnp.bfloat16):
    """One-time parameter preparation (hoisted out of the per-step forward path):
    transpose MLP weights, hoist the weight_norm (v / ||v||_row, weight_g == 1),
    pad the last-layer weight to a lane-dense multiple of the out tile, and cast
    the matmul operands to compute_dtype."""
    w1, b1 = params["w1"], params["b1"]
    w2, b2 = params["w2"], params["b2"]
    w3, b3 = params["w3"], params["b3"]
    v = params["v_last"]
    in_dim = w1.shape[1]
    hidden_dim = w1.shape[0]
    bottleneck_dim = w3.shape[0]
    out_dim = v.shape[0]

    # out tile size: multiple of 128, clamped to the padded out_dim
    bo = min(_round_up(block_out, 128), _round_up(out_dim, 128))
    out_pad = _round_up(out_dim, bo)

    # weight_norm in f32, then transpose / pad / cast once.
    wl = (v * jax.lax.rsqrt(jnp.sum(v * v, axis=-1, keepdims=True))).T  # (bottleneck, out)
    if out_pad != out_dim:
        wl = jnp.pad(wl, ((0, 0), (0, out_pad - out_dim)))

    return {
        "w1t": w1.T.astype(compute_dtype),                      # (in, hidden)
        "b1": b1.reshape(1, hidden_dim).astype(jnp.float32),
        "w2t": w2.T.astype(compute_dtype),                      # (hidden, hidden)
        "b2": b2.reshape(1, hidden_dim).astype(jnp.float32),
        "w3t": w3.T.astype(compute_dtype),                      # (hidden, bottleneck)
        "b3": b3.reshape(1, bottleneck_dim).astype(jnp.float32),
        "wl": wl.astype(compute_dtype),                         # (bottleneck, out_pad)
        "dims": (in_dim, hidden_dim, bottleneck_dim, out_dim, out_pad, bo),
        "compute_dtype": compute_dtype,
    }


def dino_head_forward(x, prepared, *, block_m=256, out_dtype=jnp.float32,
                      interpret=False):
    """x: (B, in_dim) float32.  prepared: output of prepare_params()."""
    in_dim, hidden_dim, bottleneck_dim, out_dim, out_pad, bo = prepared["dims"]
    compute_dtype = prepared["compute_dtype"]

    B = x.shape[0]
    # batch tile: multiple of 16 (bf16 sublane packing), clamped to padded batch.
    # NOTE: at real DINO shapes call 1 is a tiny fraction of the work; call 2's
    # megacore parallelism comes from the (plentiful) out-tile axis, not bm.
    bm = min(_round_up(block_m, 16), _round_up(B, 16))
    B_pad = _round_up(B, bm)
    if B_pad != B:
        x = jnp.pad(x, ((0, B_pad - B), (0, 0)))

    vmem_limit = _vmem_limit_bytes()

    # ---- call 1: 3-layer MLP + L2 normalize -> z (B_pad, bottleneck) ----
    def mlp_call(single_buffer):
        def wspec(shape):
            if single_buffer:
                # constant-index resident weights: no point double-buffering them
                return pl.BlockSpec(shape, lambda i: (0, 0),
                                    pipeline_mode=pl.Buffered(1))
            return pl.BlockSpec(shape, lambda i: (0, 0))

        return pl.pallas_call(
            functools.partial(_mlp_norm_kernel, compute_dtype=compute_dtype),
            out_shape=jax.ShapeDtypeStruct((B_pad, bottleneck_dim), compute_dtype),
            grid=(B_pad // bm,),
            in_specs=[
                pl.BlockSpec((bm, in_dim), lambda i: (i, 0)),   # x tile
                wspec((in_dim, hidden_dim)),                    # w1^T (resident)
                wspec((1, hidden_dim)),                         # b1
                wspec((hidden_dim, hidden_dim)),                # w2^T (resident)
                wspec((1, hidden_dim)),                         # b2
                wspec((hidden_dim, bottleneck_dim)),            # w3^T (resident)
                wspec((1, bottleneck_dim)),                     # b3
            ],
            out_specs=pl.BlockSpec((bm, bottleneck_dim), lambda i: (i, 0)),
            compiler_params=pltpu.CompilerParams(
                dimension_semantics=("parallel",),
                vmem_limit_bytes=vmem_limit),
            interpret=interpret,
        )(x, prepared["w1t"], prepared["b1"], prepared["w2t"], prepared["b2"],
          prepared["w3t"], prepared["b3"])

    try:
        z = mlp_call(True)
    except Exception:
        # pipeline_mode=pl.Buffered(1) unsupported on this jax version -> fall back
        z = mlp_call(False)

    # ---- call 2: weight-normalized last layer; wl streams from HBM exactly once.
    # Grid: out tiles j OUTER (parallel -> megacore splits the wide axis),
    #       batch tiles i INNER.  wl's block index depends only on j, so it is
    #       fetched once per j (once total) regardless of how many batch tiles.
    out = pl.pallas_call(
        _last_layer_kernel,
        out_shape=jax.ShapeDtypeStruct((B_pad, out_pad), out_dtype),
        grid=(out_pad // bo, B_pad // bm),
        in_specs=[
            pl.BlockSpec((bm, bottleneck_dim), lambda j, i: (i, 0)),   # z tile (tiny)
            pl.BlockSpec((bottleneck_dim, bo), lambda j, i: (0, j)),   # wl tile (streamed once)
        ],
        out_specs=pl.BlockSpec((bm, bo), lambda j, i: (i, j)),
        compiler_params=pltpu.CompilerParams(
            dimension_semantics=("parallel", "arbitrary"),
            vmem_limit_bytes=vmem_limit),
        interpret=interpret,
    )(z, prepared["wl"])

    return out[:B, :out_dim]


# --------------------------------------------------------------------------
# Synthetic init + plain-JAX reference (PyTorch semantics)
# --------------------------------------------------------------------------

def init_params(key, in_dim, hidden_dim, bottleneck_dim, out_dim):
    """Deterministic synthetic init mirroring the module's __init__ shapes.
    MLP linears: trunc_normal(std=0.02)-like weights, zero bias.
    Last layer: weight_norm(Linear(bottleneck, out, bias=False)), weight_g = 1."""
    k1, k2, k3, k4 = jax.random.split(key, 4)
    return {
        "w1": 0.02 * jax.random.truncated_normal(k1, -2.0, 2.0,
                                                 (hidden_dim, in_dim), jnp.float32),
        "b1": jnp.zeros((hidden_dim,), jnp.float32),
        "w2": 0.02 * jax.random.truncated_normal(k2, -2.0, 2.0,
                                                 (hidden_dim, hidden_dim), jnp.float32),
        "b2": jnp.zeros((hidden_dim,), jnp.float32),
        "w3": 0.02 * jax.random.truncated_normal(k3, -2.0, 2.0,
                                                 (bottleneck_dim, hidden_dim), jnp.float32),
        "b3": jnp.zeros((bottleneck_dim,), jnp.float32),
        # last_layer.weight_v (weight_g fixed to 1 -> effective W = v / ||v||_row)
        "v_last": jax.random.normal(k4, (out_dim, bottleneck_dim), jnp.float32) * 0.1,
    }


def reference_forward(x, params):
    """Plain-JAX reference mirroring the PyTorch semantics exactly (f32)."""
    h = _gelu_exact(jnp.dot(x, params["w1"].T, preferred_element_type=jnp.float32)
                    + params["b1"])
    h = _gelu_exact(jnp.dot(h, params["w2"].T, preferred_element_type=jnp.float32)
                    + params["b2"])
    h = jnp.dot(h, params["w3"].T, preferred_element_type=jnp.float32) + params["b3"]
    n = jnp.sqrt(jnp.sum(h * h, axis=-1, keepdims=True))
    h = h / jnp.maximum(n, 1e-12)
    v = params["v_last"]
    w = v / jnp.sqrt(jnp.sum(v * v, axis=-1, keepdims=True))
    return jnp.dot(h, w.T, preferred_element_type=jnp.float32)


if __name__ == "__main__":
    # Small shapes consistent with DINOHead(in_dim, out_dim, hidden_dim, bottleneck_dim)
    B, IN_DIM, HIDDEN, BOTTLENECK, OUT_DIM = 16, 32, 64, 32, 64

    key = jax.random.PRNGKey(0)
    kx, kp = jax.random.split(key)
    x = jax.random.normal(kx, (B, IN_DIM), jnp.float32)
    params = init_params(kp, IN_DIM, HIDDEN, BOTTLENECK, OUT_DIM)
    ref = reference_forward(x, params)

    # f32 operand path: tight check of exact forward semantics.
    prep_f32 = prepare_params(params, compute_dtype=jnp.float32)
    out_f32 = jax.block_until_ready(dino_head_forward(x, prep_f32))
    assert out_f32.shape == (B, OUT_DIM)
    assert jnp.allclose(out_f32, ref, rtol=1e-4, atol=1e-4), "f32 mismatch vs reference"

    # bf16 matmul-operand path (performance default): loose check (~1e-2 drift).
    prep_bf16 = prepare_params(params, compute_dtype=jnp.bfloat16)
    out_bf16 = jax.block_until_ready(dino_head_forward(x, prep_bf16))
    assert out_bf16.shape == (B, OUT_DIM)
    assert jnp.allclose(out_bf16, ref, rtol=5e-2, atol=5e-2), "bf16 mismatch vs reference"

    print("KERNEL_OK")
</pallas_src>

<mosaic_0001>
module attributes {stable_mosaic.version = 11 : i64} {
  func.func @_mlp_norm_kernel(%arg0: i32, %arg1: memref<16x32xf32, #tpu.memory_space<vmem>>, %arg2: memref<32x64xf32, #tpu.memory_space<vmem>>, %arg3: memref<1x64xf32, #tpu.memory_space<vmem>>, %arg4: memref<64x64xf32, #tpu.memory_space<vmem>>, %arg5: memref<1x64xf32, #tpu.memory_space<vmem>>, %arg6: memref<64x32xf32, #tpu.memory_space<vmem>>, %arg7: memref<1x32xf32, #tpu.memory_space<vmem>>, %arg8: memref<16x32xf32, #tpu.memory_space<vmem>>) attributes {dimension_semantics = [#tpu.dimension_semantics<parallel>], iteration_bounds = array<i64: 1>, scalar_prefetch = 0 : i64, scratch_operands = 0 : i64, tpu.core_type = #tpu.core_type<tc>, window_params = [{transform_indices = @transform_0, window_bounds = array<i64: 16, 32>}, {pipeline_mode = #tpu.pipeline_mode<synchronous>, transform_indices = @transform_1, window_bounds = array<i64: 32, 64>}, {pipeline_mode = #tpu.pipeline_mode<synchronous>, transform_indices = @transform_2, window_bounds = array<i64: 1, 64>}, {pipeline_mode = #tpu.pipeline_mode<synchronous>, transform_indices = @transform_3, window_bounds = array<i64: 64, 64>}, {pipeline_mode = #tpu.pipeline_mode<synchronous>, transform_indices = @transform_4, window_bounds = array<i64: 1, 64>}, {pipeline_mode = #tpu.pipeline_mode<synchronous>, transform_indices = @transform_5, window_bounds = array<i64: 64, 32>}, {pipeline_mode = #tpu.pipeline_mode<synchronous>, transform_indices = @transform_6, window_bounds = array<i64: 1, 32>}, {transform_indices = @transform_7, window_bounds = array<i64: 16, 32>}]} {
    %c0 = arith.constant 0 : index
    %c0_0 = arith.constant 0 : index
    %0 = vector.load %arg1[%c0, %c0_0] : memref<16x32xf32, #tpu.memory_space<vmem>>, vector<16x32xf32>
    %c0_1 = arith.constant 0 : index
    %c0_2 = arith.constant 0 : index
    %1 = vector.load %arg2[%c0_1, %c0_2] : memref<32x64xf32, #tpu.memory_space<vmem>>, vector<32x64xf32>
    %cst = arith.constant dense<0.000000e+00> : vector<16x64xf32>
    %2 = tpu.matmul %0, %1, %cst {dimension_numbers = #tpu.dot_dimension_numbers<[1], [0], [0], [1], [0, 0, 1, 1], [], []>} : vector<16x32xf32>, vector<32x64xf32>, vector<16x64xf32> -> vector<16x64xf32>
    %c0_3 = arith.constant 0 : index
    %c0_4 = arith.constant 0 : index
    %3 = vector.load %arg3[%c0_3, %c0_4] : memref<1x64xf32, #tpu.memory_space<vmem>>, vector<1x64xf32>
    %4 = vector.broadcast %3 : vector<1x64xf32> to vector<16x64xf32>
    %5 = arith.addf %2, %4 : vector<16x64xf32>
    %cst_5 = arith.constant 5.000000e-01 : f32
    %6 = vector.broadcast %cst_5 : f32 to vector<16x64xf32>
    %7 = arith.mulf %6, %5 : vector<16x64xf32>
    %cst_6 = arith.constant 0.707106769 : f32
    %8 = vector.broadcast %cst_6 : f32 to vector<16x64xf32>
    %9 = arith.mulf %5, %8 : vector<16x64xf32>
    %10 = math.erf %9 : vector<16x64xf32>
    %cst_7 = arith.constant 1.000000e+00 : f32
    %11 = vector.broadcast %cst_7 : f32 to vector<16x64xf32>
    %12 = arith.addf %11, %10 : vector<16x64xf32>
    %13 = arith.mulf %7, %12 : vector<16x64xf32>
    %c0_8 = arith.constant 0 : index
    %c0_9 = arith.constant 0 : index
    %14 = vector.load %arg4[%c0_8, %c0_9] : memref<64x64xf32, #tpu.memory_space<vmem>>, vector<64x64xf32>
    %cst_10 = arith.constant dense<0.000000e+00> : vector<16x64xf32>
    %15 = tpu.matmul %13, %14, %cst_10 {dimension_numbers = #tpu.dot_dimension_numbers<[1], [0], [0], [1], [0, 0, 1, 1], [], []>} : vector<16x64xf32>, vector<64x64xf32>, vector<16x64xf32> -> vector<16x64xf32>
    %c0_11 = arith.constant 0 : index
    %c0_12 = arith.constant 0 : index
    %16 = vector.load %arg5[%c0_11, %c0_12] : memref<1x64xf32, #tpu.memory_space<vmem>>, vector<1x64xf32>
    %17 = vector.broadcast %16 : vector<1x64xf32> to vector<16x64xf32>
    %18 = arith.addf %15, %17 : vector<16x64xf32>
    %cst_13 = arith.constant 5.000000e-01 : f32
    %19 = vector.broadcast %cst_13 : f32 to vector<16x64xf32>
    %20 = arith.mulf %19, %18 : vector<16x64xf32>
    %cst_14 = arith.constant 0.707106769 : f32
    %21 = vector.broadcast %cst_14 : f32 to vector<16x64xf32>
    %22 = arith.mulf %18, %21 : vector<16x64xf32>
    %23 = math.erf %22 : vector<16x64xf32>
    %cst_15 = arith.constant 1.000000e+00 : f32
    %24 = vector.broadcast %cst_15 : f32 to vector<16x64xf32>
    %25 = arith.addf %24, %23 : vector<16x64xf32>
    %26 = arith.mulf %20, %25 : vector<16x64xf32>
    %c0_16 = arith.constant 0 : index
    %c0_17 = arith.constant 0 : index
    %27 = vector.load %arg6[%c0_16, %c0_17] : memref<64x32xf32, #tpu.memory_space<vmem>>, vector<64x32xf32>
    %cst_18 = arith.constant dense<0.000000e+00> : vector<16x32xf32>
    %28 = tpu.matmul %26, %27, %cst_18 {dimension_numbers = #tpu.dot_dimension_numbers<[1], [0], [0], [1], [0, 0, 1, 1], [], []>} : vector<16x64xf32>, vector<64x32xf32>, vector<16x32xf32> -> vector<16x32xf32>
    %c0_19 = arith.constant 0 : index
    %c0_20 = arith.constant 0 : index
    %29 = vector.load %arg7[%c0_19, %c0_20] : memref<1x32xf32, #tpu.memory_space<vmem>>, vector<1x32xf32>
    %30 = vector.broadcast %29 : vector<1x32xf32> to vector<16x32xf32>
    %31 = arith.addf %28, %30 : vector<16x32xf32>
    %32 = arith.mulf %31, %31 : vector<16x32xf32>
    %cst_21 = arith.constant dense<0.000000e+00> : vector<16xf32>
    %33 = vector.multi_reduction <add>, %32, %cst_21 [1] : vector<16x32xf32> to vector<16xf32>
    %34 = vector.shape_cast %33 : vector<16xf32> to vector<16x1xf32>
    %cst_22 = arith.constant 1.000000e-24 : f32
    %35 = vector.broadcast %cst_22 : f32 to vector<16x1xf32>
    %36 = arith.maximumf %34, %35 : vector<16x1xf32>
    %37 = math.rsqrt %36 : vector<16x1xf32>
    %38 = vector.broadcast %37 : vector<16x1xf32> to vector<16x32xf32>
    %39 = arith.mulf %31, %38 : vector<16x32xf32>
    %c0_23 = arith.constant 0 : index
    %c0_24 = arith.constant 0 : index
    %40 = vector.load %arg8[%c0_23, %c0_24] : memref<16x32xf32, #tpu.memory_space<vmem>>, vector<16x32xf32>
    tpu.vector_store %arg8[%c0_23, %c0_24], %39 {strides = array<i32>} : memref<16x32xf32, #tpu.memory_space<vmem>>, vector<16x32xf32>,
    return
  }
  func.func @transform_0(%arg0: i32) -> (i32, i32) {
    %c0_i32 = arith.constant 0 : i32
    %c0_i32_0 = arith.constant 0 : i32
    return %arg0, %c0_i32 : i32, i32
  }
  func.func @transform_1(%arg0: i32) -> (i32, i32) {
    %c0_i32 = arith.constant 0 : i32
    %c0_i32_0 = arith.constant 0 : i32
    %c0_i32_1 = arith.constant 0 : i32
    return %c0_i32, %c0_i32_0 : i32, i32
  }
  func.func @transform_2(%arg0: i32) -> (i32, i32) {
    %c0_i32 = arith.constant 0 : i32
    %c0_i32_0 = arith.constant 0 : i32
    %c0_i32_1 = arith.constant 0 : i32
    return %c0_i32, %c0_i32_0 : i32, i32
  }
  func.func @transform_3(%arg0: i32) -> (i32, i32) {
    %c0_i32 = arith.constant 0 : i32
    %c0_i32_0 = arith.constant 0 : i32
    %c0_i32_1 = arith.constant 0 : i32
    return %c0_i32, %c0_i32_0 : i32, i32
  }
  func.func @transform_4(%arg0: i32) -> (i32, i32) {
    %c0_i32 = arith.constant 0 : i32
    %c0_i32_0 = arith.constant 0 : i32
    %c0_i32_1 = arith.constant 0 : i32
    return %c0_i32, %c0_i32_0 : i32, i32
  }
  func.func @transform_5(%arg0: i32) -> (i32, i32) {
    %c0_i32 = arith.constant 0 : i32
    %c0_i32_0 = arith.constant 0 : i32
    %c0_i32_1 = arith.constant 0 : i32
    return %c0_i32, %c0_i32_0 : i32, i32
  }
  func.func @transform_6(%arg0: i32) -> (i32, i32) {
    %c0_i32 = arith.constant 0 : i32
    %c0_i32_0 = arith.constant 0 : i32
    %c0_i32_1 = arith.constant 0 : i32
    return %c0_i32, %c0_i32_0 : i32, i32
  }
  func.func @transform_7(%arg0: i32) -> (i32, i32) {
    %c0_i32 = arith.constant 0 : i32
    %c0_i32_0 = arith.constant 0 : i32
    return %arg0, %c0_i32 : i32, i32
  }
}

module attributes {stable_mosaic.version = 11 : i64} {
  func.func @_mlp_norm_kernel(%arg0: i32, %arg1: memref<16x32xf32, #tpu.memory_space<vmem>>, %arg2: memref<32x64xf32, #tpu.memory_space<vmem>>, %arg3: memref<1x64xf32, #tpu.memory_space<vmem>>, %arg4: memref<64x64xf32, #tpu.memory_space<vmem>>, %arg5: memref<1x64xf32, #tpu.memory_space<vmem>>, %arg6: memref<64x32xf32, #tpu.memory_space<vmem>>, %arg7: memref<1x32xf32, #tpu.memory_space<vmem>>, %arg8: memref<16x32xf32, #tpu.memory_space<vmem>>) attributes {dimension_semantics = [#tpu.dimension_semantics<parallel>], iteration_bounds = array<i64: 1>, scalar_prefetch = 0 : i64, scratch_operands = 0 : i64, tpu.core_type = #tpu.core_type<tc>, window_params = [{transform_indices = @transform_0, window_bounds = array<i64: 16, 32>}, {pipeline_mode = #tpu.pipeline_mode<synchronous>, transform_indices = @transform_1, window_bounds = array<i64: 32, 64>}, {pipeline_mode = #tpu.pipeline_mode<synchronous>, transform_indices = @transform_2, window_bounds = array<i64: 1, 64>}, {pipeline_mode = #tpu.pipeline_mode<synchronous>, transform_indices = @transform_3, window_bounds = array<i64: 64, 64>}, {pipeline_mode = #tpu.pipeline_mode<synchronous>, transform_indices = @transform_4, window_bounds = array<i64: 1, 64>}, {pipeline_mode = #tpu.pipeline_mode<synchronous>, transform_indices = @transform_5, window_bounds = array<i64: 64, 32>}, {pipeline_mode = #tpu.pipeline_mode<synchronous>, transform_indices = @transform_6, window_bounds = array<i64: 1, 32>}, {transform_indices = @transform_7, window_bounds = array<i64: 16, 32>}]} {
    %c0 = arith.constant 0 : index
    %c0_0 = arith.constant 0 : index
    %0 = vector.load %arg1[%c0, %c0_0] : memref<16x32xf32, #tpu.memory_space<vmem>>, vector<16x32xf32>
    %c0_1 = arith.constant 0 : index
    %c0_2 = arith.constant 0 : index
    %1 = vector.load %arg2[%c0_1, %c0_2] : memref<32x64xf32, #tpu.memory_space<vmem>>, vector<32x64xf32>
    %cst = arith.constant dense<0.000000e+00> : vector<16x64xf32>
    %2 = tpu.matmul %0, %1, %cst {dimension_numbers = #tpu.dot_dimension_numbers<[1], [0], [0], [1], [0, 0, 1, 1], [], []>} : vector<16x32xf32>, vector<32x64xf32>, vector<16x64xf32> -> vector<16x64xf32>
    %c0_3 = arith.constant 0 : index
    %c0_4 = arith.constant 0 : index
    %3 = vector.load %arg3[%c0_3, %c0_4] : memref<1x64xf32, #tpu.memory_space<vmem>>, vector<1x64xf32>
    %4 = vector.broadcast %3 : vector<1x64xf32> to vector<16x64xf32>
    %5 = arith.addf %2, %4 : vector<16x64xf32>
    %cst_5 = arith.constant 5.000000e-01 : f32
    %6 = vector.broadcast %cst_5 : f32 to vector<16x64xf32>
    %7 = arith.mulf %6, %5 : vector<16x64xf32>
    %cst_6 = arith.constant 0.707106769 : f32
    %8 = vector.broadcast %cst_6 : f32 to vector<16x64xf32>
    %9 = arith.mulf %5, %8 : vector<16x64xf32>
    %10 = math.erf %9 : vector<16x64xf32>
    %cst_7 = arith.constant 1.000000e+00 : f32
    %11 = vector.broadcast %cst_7 : f32 to vector<16x64xf32>
    %12 = arith.addf %11, %10 : vector<16x64xf32>
    %13 = arith.mulf %7, %12 : vector<16x64xf32>
    %c0_8 = arith.constant 0 : index
    %c0_9 = arith.constant 0 : index
    %14 = vector.load %arg4[%c0_8, %c0_9] : memref<64x64xf32, #tpu.memory_space<vmem>>, vector<64x64xf32>
    %cst_10 = arith.constant dense<0.000000e+00> : vector<16x64xf32>
    %15 = tpu.matmul %13, %14, %cst_10 {dimension_numbers = #tpu.dot_dimension_numbers<[1], [0], [0], [1], [0, 0, 1, 1], [], []>} : vector<16x64xf32>, vector<64x64xf32>, vector<16x64xf32> -> vector<16x64xf32>
    %c0_11 = arith.constant 0 : index
    %c0_12 = arith.constant 0 : index
    %16 = vector.load %arg5[%c0_11, %c0_12] : memref<1x64xf32, #tpu.memory_space<vmem>>, vector<1x64xf32>
    %17 = vector.broadcast %16 : vector<1x64xf32> to vector<16x64xf32>
    %18 = arith.addf %15, %17 : vector<16x64xf32>
    %cst_13 = arith.constant 5.000000e-01 : f32
    %19 = vector.broadcast %cst_13 : f32 to vector<16x64xf32>
    %20 = arith.mulf %19, %18 : vector<16x64xf32>
    %cst_14 = arith.constant 0.707106769 : f32
    %21 = vector.broadcast %cst_14 : f32 to vector<16x64xf32>
    %22 = arith.mulf %18, %21 : vector<16x64xf32>
    %23 = math.erf %22 : vector<16x64xf32>
    %cst_15 = arith.constant 1.000000e+00 : f32
    %24 = vector.broadcast %cst_15 : f32 to vector<16x64xf32>
    %25 = arith.addf %24, %23 : vector<16x64xf32>
    %26 = arith.mulf %20, %25 : vector<16x64xf32>
    %c0_16 = arith.constant 0 : index
    %c0_17 = arith.constant 0 : index
    %27 = vector.load %arg6[%c0_16, %c0_17] : memref<64x32xf32, #tpu.memory_space<vmem>>, vector<64x32xf32>
    %cst_18 = arith.constant dense<0.000000e+00> : vector<16x32xf32>
    %28 = tpu.matmul %26, %27, %cst_18 {dimension_numbers = #tpu.dot_dimension_numbers<[1], [0], [0], [1], [0, 0, 1, 1], [], []>} : vector<16x64xf32>, vector<64x32xf32>, vector<16x32xf32> -> vector<16x32xf32>
    %c0_19 = arith.constant 0 : index
    %c0_20 = arith.constant 0 : index
    %29 = vector.load %arg7[%c0_19, %c0_20] : memref<1x32xf32, #tpu.memory_space<vmem>>, vector<1x32xf32>
    %30 = vector.broadcast %29 : vector<1x32xf32> to vector<16x32xf32>
    %31 = arith.addf %28, %30 : vector<16x32xf32>
    %32 = arith.mulf %31, %31 : vector<16x32xf32>
    %cst_21 = arith.constant dense<0.000000e+00> : vector<16xf32>
    %33 = vector.multi_reduction <add>, %32, %cst_21 [1] : vector<16x32xf32> to vector<16xf32>
    %34 = vector.shape_cast %33 : vector<16xf32> to vector<16x1xf32>
    %cst_22 = arith.constant 1.000000e-24 : f32
    %35 = vector.broadcast %cst_22 : f32 to vector<16x1xf32>
    %36 = arith.maximumf %34, %35 : vector<16x1xf32>
    %37 = math.rsqrt %36 : vector<16x1xf32>
    %38 = vector.broadcast %37 : vector<16x1xf32> to vector<16x32xf32>
    %39 = arith.mulf %31, %38 : vector<16x32xf32>
    %c0_23 = arith.constant 0 : index
    %c0_24 = arith.constant 0 : index
    %40 = vector.load %arg8[%c0_23, %c0_24] : memref<16x32xf32, #tpu.memory_space<vmem>>, vector<16x32xf32>
    tpu.vector_store %arg8[%c0_23, %c0_24], %39 {strides = array<i32>} : memref<16x32xf32, #tpu.memory_space<vmem>>, vector<16x32xf32>,
    return
  }
  func.func @transform_0(%arg0: i32) -> (i32, i32) {
    %c0_i32 = arith.constant 0 : i32
    %c0_i32_0 = arith.constant 0 : i32
    return %arg0, %c0_i32 : i32, i32
  }
  func.func @transform_1(%arg0: i32) -> (i32, i32) {
    %c0_i32 = arith.constant 0 : i32
    %c0_i32_0 = arith.constant 0 : i32
    %c0_i32_1 = arith.constant 0 : i32
    return %c0_i32, %c0_i32_0 : i32, i32
  }
  func.func @transform_2(%arg0: i32) -> (i32, i32) {
    %c0_i32 = arith.constant 0 : i32
    %c0_i32_0 = arith.constant 0 : i32
    %c0_i32_1 = arith.constant 0 : i32
    return %c0_i32, %c0_i32_0 : i32, i32
  }
  func.func @transform_3(%arg0: i32) -> (i32, i32) {
    %c0_i32 = arith.constant 0 : i32
    %c0_i32_0 = arith.constant 0 : i32
    %c0_i32_1 = arith.constant 0 : i32
    return %c0_i32, %c0_i32_0 : i32, i32
  }
  func.func @transform_4(%arg0: i32) -> (i32, i32) {
    %c0_i32 = arith.constant 0 : i32
    %c0_i32_0 = arith.constant 0 : i32
    %c0_i32_1 = arith.constant 0 : i32
    return %c0_i32, %c0_i32_0 : i32, i32
  }
  func.func @transform_5(%arg0: i32) -> (i32, i32) {
    %c0_i32 = arith.constant 0 : i32
    %c0_i32_0 = arith.constant 0 : i32
    %c0_i32_1 = arith.constant 0 : i32
    return %c0_i32, %c0_i32_0 : i32, i32
  }
  func.func @transform_6(%arg0: i32) -> (i32, i32) {
    %c0_i32 = arith.constant 0 : i32
    %c0_i32_0 = arith.constant 0 : i32
    %c0_i32_1 = arith.constant 0 : i32
    return %c0_i32, %c0_i32_0 : i32, i32
  }
  func.func @transform_7(%arg0: i32) -> (i32, i32) {
    %c0_i32 = arith.constant 0 : i32
    %c0_i32_0 = arith.constant 0 : i32
    return %arg0, %c0_i32 : i32, i32
  }
}

</mosaic_0001>

<bundles_post_ra>
// kernel: tpu_custom_call.1
= control target key start
LH: loop header
LB: loop body
LE: loop exit
PB: predicated region body
PF: predicated region fallthrough
CT: control target
= control target key end

     0   :  { %12 = vsyncpa [#allocation3], 0  ;;  %s723_s0 = inlined_call_operand.hbm [shape: f32[16,32], index: 0, kind: input, shape index: {}]   ;;  %s724_s1 = inlined_call_operand.vmem [shape: f32[32,64], index: 1, kind: input, shape index: {}]   ;;  %s725_s2 = inlined_call_operand.vmem [shape: f32[1,64], index: 2, kind: input, shape index: {}]   ;;  %s726_s3 = inlined_call_operand.vmem [shape: f32[64,64], index: 3, kind: input, shape index: {}]   ;;  %s727_s4 = inlined_call_operand.vmem [shape: f32[1,64], index: 4, kind: input, shape index: {}]   ;;  %s728_s5 = inlined_call_operand.vmem [shape: f32[64,32], index: 5, kind: input, shape index: {}]   ;;  %s729_s6 = inlined_call_operand.vmem [shape: f32[1,32], index: 6, kind: input, shape index: {}]   ;;  %s730_s7 = inlined_call_operand.hbm [shape: f32[16,32], index: 7, kind: output, shape index: {}]  }
   0x1   :  { %13 = vsyncpa [#allocation4], 0  ;;  %s570_s24 = smov [#allocation2]   ;;  %s522_s28 = scalar_lea.hbm %s723_s0, 256 }
   0x2   :  { %s19_s25 = sshll.u32 %s570_s24, 4  ;;  %p523_p0 = scmp.ne.s32.totalorder %s723_s0, %s522_s28  ;;  %s20_s25 = int_to_ptr.vmem [resolvable:$true] %s19_s25 }
   0x3   :  { %p526_p1 = scmp.lt.u32.totalorder %s522_s28, %s723_s0 }
   0x5   :  { %p528_p2 = pnand %p526_p1, %p523_p0 }
   0x7   :  { %531 = shalt.err (!%p528_p2)
}
   0x8   :  { %s532_s10 = scalar_lea.vmem %s20_s25, 256  ;;  %p537_p4 = scmp.lt.s32.totalorder %s20_s25, %s20_s25 }
   0x9   :  { %p533_p3 = scmp.ne.s32.totalorder %s20_s25, %s532_s10  ;;  %p538_p5 = scmp.lt.s32.totalorder %s532_s10, %s532_s10 }
   0xb   :  { %p539_p6 = por %p538_p5, %p537_p4 }
   0xd   :  { %p540_p7 = pnand %p539_p6, %p533_p3 }
   0xf   :  { %543 = shalt.err (!%p540_p7)
}
  0x10   :  { %s571_s11 = smov 128   ;;  %s572_s12 = smov 8  }
  0x11   :  { %25 = dma.hbm_to_vmem [thread:$0]  %s723_s0, 256, %s20_s25, [#allocation3], %s571_s11, %s571_s11, %s572_s12  }
  0x12   :  { %566 = dma.done.wait [#allocation3], 256  }
  0x13   :  { %567 = vsyncadd [#allocation3], 4294967040  ;;  %vm54_vm0 = vcmask 261120   ;;  %v43_v0 = vld [vmem:[%s724_s1] sm:$0xff]  ;;  %v44_v1 = vld [vmem:[%s724_s1 + $0x8] sm:$0xff]  ;;  %vm161_vm1 = vcmask 523264  }
  0x14   :  { %v45_v2 = vld [vmem:[%s724_s1 + $0x10] sm:$0xff]  ;;  %v466_v3 = vpack.c.bf16 %v44_v1, %v43_v0  ;;  %v46_v4 = vld [vmem:[%s724_s1 + $0x18] sm:$0xff]  ;;  %v41_v5 = vld [vmem:[#allocation2] sm:$0xff] }
  0x15   :  { %v470_v6 = vpack.c.bf16 %v46_v4, %v45_v2  ;;  %425 = vmatprep.mubr.msk.f32.mxu0 %vm54_vm0, %v41_v5  ;;  %v42_v7 = vld [vmem:[#allocation2 + $0x8] sm:$0xff]  ;;  %v146_v8 = vld [vmem:[%s726_s3] sm:$0xff]  ;;  %v148_v11 = vld [vmem:[%s726_s3 + $0x10] sm:$0xff] }
  0x16   :  { %467 = vmatprep.subr.bf16.mxu0 %v466_v3  ;;  %v147_v9 = vld [vmem:[%s726_s3 + $0x8] sm:$0xff]  ;;  %v149_v12 = vld [vmem:[%s726_s3 + $0x18] sm:$0xff]  ;;  %v150_v14 = vld [vmem:[%s726_s3 + $0x20] sm:$0xff] }
  0x17   :  { %469 = vmatpush3.bf16.msra.mxu0 %v466_v3  ;;  %v474_v10 = vpack.c.bf16 %v147_v9, %v146_v8  ;;  %v478_v13 = vpack.c.bf16 %v149_v12, %v148_v11  ;;  %v151_v15 = vld [vmem:[%s726_s3 + $0x28] sm:$0xff]  ;;  %v152_v17 = vld [vmem:[%s726_s3 + $0x30] sm:$0xff]  ;;  %v153_v18 = vld [vmem:[%s726_s3 + $0x38] sm:$0xff] }
  0x18   :  { %471 = vmatprep.subr.bf16.mxu0 %v470_v6  ;;  %v482_v16 = vpack.c.bf16 %v151_v15, %v150_v14  ;;  %v486_v19 = vpack.c.bf16 %v153_v18, %v152_v17  ;;  %v382_v20 = vld [vmem:[%s725_s2] ss:$0 sm:$0xff]  ;;  %v254_v36 = vld [vmem:[%s728_s5 + $0x8] sm:$0xff]  ;;  %v255_v38 = vld [vmem:[%s728_s5 + $0x10] sm:$0xff] }
  0x19   :  { %475 = vmatprep.subr.bf16.mxu1 %v474_v10  ;;  %v253_v35 = vld [vmem:[%s728_s5] sm:$0xff]  ;;  %v256_v39 = vld [vmem:[%s728_s5 + $0x18] sm:$0xff]  ;;  %v258_v42 = vld [vmem:[%s728_s5 + $0x28] sm:$0xff] }
  0x1a   :  { %477 = vmatpush3.bf16.msra.mxu1 %v474_v10  ;;  %v490_v37 = vpack.c.bf16 %v254_v36, %v253_v35  ;;  %v494_v40 = vpack.c.bf16 %v256_v39, %v255_v38  ;;  %v257_v41 = vld [vmem:[%s728_s5 + $0x20] sm:$0xff]  ;;  %v259_v44 = vld [vmem:[%s728_s5 + $0x30] sm:$0xff]  ;;  %v260_v45 = vld [vmem:[%s728_s5 + $0x38] sm:$0xff] }
  0x1b   :  { %473 = vmatpush3.bf16.msra.mxu0 %v470_v6  ;;  %479 = vmatprep.subr.bf16.mxu1 %v478_v13  ;;  %v498_v43 = vpack.c.bf16 %v258_v42, %v257_v41  ;;  %v502_v46 = vpack.c.bf16 %v260_v45, %v259_v44  ;;  %v385_v47 = vld [vmem:[%s727_s4] ss:$0 sm:$0xff] }
  0x1c   :  { %491 = vmatprep.subr.bf16.mxu0 %v490_v37  ;;  %v388_v62 = vld [vmem:[%s729_s6] ss:$0 sm:$0xff]  ;;  %s573_s6 = smov [#allocation5]  }
  0x1d   :  { %s370_s9 = sshll.u32 %s573_s6, 4  ;;  %s371_s9 = int_to_ptr.vmem [resolvable:$true] %s370_s9 }
  0x1e   :  { %426 = vmatmul.mubr.msk.f32.vlgmr.msra.gmra.mrb[0].mxu0 %vm54_vm0, %v42_v7  ;;  %481 = vmatpush3.bf16.msra.mxu1 %v478_v13  ;;  %s544_s10 = scalar_lea.vmem %s371_s9, 256  ;;  %p549_p9 = scmp.lt.s32.totalorder %s371_s9, %s371_s9 }
  0x1f   :  { %483 = vmatprep.subr.bf16.mxu1 %v482_v16  ;;  %493 = vmatpush3.bf16.msra.mxu0 %v490_v37  ;;  %p545_p8 = scmp.ne.s32.totalorder %s371_s9, %s544_s10  ;;  %p550_p10 = scmp.lt.s32.totalorder %s544_s10, %s544_s10 }
  0x20   :  { %495 = vmatprep.subr.bf16.mxu0 %v494_v40 }
  0x21   :  { %p551_p11 = por %p550_p10, %p549_p9 }
  0x22   :  { %485 = vmatpush3.bf16.msra.mxu1 %v482_v16 }
  0x23   :  { %487 = vmatprep.subr.bf16.mxu1 %v486_v19  ;;  %497 = vmatpush3.bf16.msra.mxu0 %v494_v40  ;;  %p552_p12 = pnand %p551_p11, %p545_p8 }
  0x24   :  { %499 = vmatprep.subr.bf16.mxu0 %v498_v43 }
  0x26   :  { %489 = vmatpush3.bf16.msra.mxu1 %v486_v19 }
  0x27   :  { %501 = vmatpush3.bf16.msra.mxu0 %v498_v43 }
  0x28   :  { %503 = vmatprep.subr.bf16.mxu0 %v502_v46 }
  0x2b   :  { %505 = vmatpush3.bf16.msra.mxu0 %v502_v46 }
  0xf1   :  { %v427_v21 = vpop.f32.mrb[0].mxu0 }
  0xf2   :  { %v133_v22 = vadd.f32 %v427_v21, %v382_v20  ;;  %v127_v23 = vpop.f32.mrb[1].mxu0 }
  0xf3   :  { %v128_v24 = vadd.f32 %v382_v20, %v127_v23 }
  0xf4   :  { %v139_v25 = vmul.f32 0.70710677, %v133_v22  ;;  %v137_v32 = vmul.f32 0.5, %v133_v22 }
  0xf5   :  { %v138_v26 = vmul.f32 0.70710677, %v128_v24  ;;  %v136_v30 = vmul.f32 0.5, %v128_v24 }
  0xf6   :  { %510 = verf.f32 %v139_v25 }
  0xf7   :  { %512 = verf.f32 %v138_v26 }
 0x100   :  { %v511_v27 = vpop.eup %510 }
 0x101   :  { %v513_v28 = vpop.eup %512  ;;  %v143_v29 = vadd.f32 1.0, %v511_v27 }
 0x102   :  { %v142_v31 = vadd.f32 1.0, %v513_v28 }
 0x103   :  { %v145_v34 = vmul.f32 %v143_v29, %v137_v32 }
 0x104   :  { %v144_v33 = vmul.f32 %v142_v31, %v136_v30 }
 0x106   :  { %444 = vmatprep.mubr.msk.f32.mxu1 %vm161_vm1, %v144_v33 }
 0x107   :  { %445 = vmatmul.mubr.msk.f32.vlgmr.msra.gmra.mrb[0].mxu1 %vm161_vm1, %v145_v34 }
 0x1da   :  { %v446_v48 = vpop.f32.mrb[0].mxu1 }
 0x1db   :  { %v240_v49 = vadd.f32 %v446_v48, %v385_v47  ;;  %v234_v50 = vpop.f32.mrb[1].mxu1 }
 0x1dc   :  { %v235_v51 = vadd.f32 %v385_v47, %v234_v50 }
 0x1dd   :  { %v246_v52 = vmul.f32 0.70710677, %v240_v49  ;;  %v244_v59 = vmul.f32 0.5, %v240_v49 }
 0x1de   :  { %v245_v53 = vmul.f32 0.70710677, %v235_v51  ;;  %v243_v57 = vmul.f32 0.5, %v235_v51 }
 0x1df   :  { %514 = verf.f32 %v246_v52 }
 0x1e0   :  { %516 = verf.f32 %v245_v53 }
 0x1e9   :  { %v515_v54 = vpop.eup %514 }
 0x1ea   :  { %v517_v55 = vpop.eup %516  ;;  %v250_v56 = vadd.f32 1.0, %v515_v54 }
 0x1eb   :  { %v249_v58 = vadd.f32 1.0, %v517_v55 }
 0x1ec   :  { %v252_v61 = vmul.f32 %v250_v56, %v244_v59 }
 0x1ed   :  { %v251_v60 = vmul.f32 %v249_v58, %v243_v57 }
 0x1ef   :  { %463 = vmatprep.mubr.msk.f32.mxu0 %vm161_vm1, %v251_v60 }
 0x1f0   :  { %464 = vmatmul.mubr.msk.f32.vlgmr.msra.gmra.mrb[2].mxu0 %vm161_vm1, %v252_v61 }
 0x2c3   :  { %v465_v63 = vpop.f32.mrb[2].mxu0 }
 0x2c4   :  { %v340_v0 = vpop.f32.mrb[3].mxu0  ;;  %v346_v1 = vadd.f32 %v465_v63, %v388_v62 }
 0x2c5   :  { %v341_v2 = vadd.f32 %v388_v62, %v340_v0 }
 0x2c6   :  { %v350_v5 = vmul.f32 %v346_v1, %v346_v1 }
 0x2c7   :  { %v349_v3 = vmul.f32 %v341_v2, %v341_v2 }
 0x2c8   :  { %v354_v6 = vsel %vm54_vm0, %v350_v5, 0.0 }
 0x2c9   :  { %v351_v4 = vsel %vm54_vm0, %v349_v3, 0.0 }
 0x2ca   :  { %352 = vadd.xlane.f32.xlu0 %v351_v4 }
 0x2ce   :  { %355 = vadd.xlane.f32.xlu0 %v354_v6 }
 0x357   :  { %v353_v7 = vpop.xlane.xlu0 %352 }
 0x358   :  { %v357_v8 = vmax.f32 %v353_v7, 1e-24 }
 0x35a   :  { %518 = vrsqrt.f32 %v357_v8 }
 0x35b   :  { %v356_v9 = vpop.xlane.xlu0 %355 }
 0x35c   :  { %v358_v10 = vmax.f32 %v356_v9, 1e-24 }
 0x35e   :  { %520 = vrsqrt.f32 %v358_v10 }
 0x364   :  { %v519_v11 = vpop.eup %518 }
 0x365   :  { %v361_v12 = vmul.f32 %v519_v11, %v341_v2 }
 0x367   :  { %363 = vst.msk [vmem:[#allocation5] sm:$0xff] %vm54_vm0, %v361_v12 }
 0x368   :  { %v521_v13 = vpop.eup %520 }
 0x369   :  { %v362_v14 = vmul.f32 %v521_v13, %v346_v1 }
 0x36b   :  { %364 = vst.msk [vmem:[#allocation5 + $0x8] sm:$0xff] %vm54_vm0, %v362_v14 }
 0x36c   :  { %555 = shalt.err (!%p552_p12)
}
 0x36d   :  { %s556_s15 = scalar_lea.hbm %s730_s7, 256 }
 0x36e   :  { %p557_p13 = scmp.ne.s32.totalorder %s730_s7, %s556_s15  ;;  %p560_p0 = scmp.lt.u32.totalorder %s556_s15, %s730_s7 }
 0x370   :  { %p562_p1 = pnand %p560_p0, %p557_p13 }
 0x372   :  { %565 = shalt.err (!%p562_p1)
}
 0x373   :  { %376 = dma.vmem_to_hbm [thread:$0]  %s371_s9, 256, %s730_s7, [#allocation4], %s571_s11, %s571_s11, %s572_s12  }
 0x374   :  { %568 = dma.done.wait [#allocation4], 256  }
 0x375   :  { %569 = vsyncadd [#allocation4], 4294967040 }
 0x376   :  { %380 = vsyncpa [#allocation3], 1 }
 0x377   :  { %381 = vsyncpa [#allocation4], 1 }

// kernel: tpu_custom_call.1
= control target key start
LH: loop header
LB: loop body
LE: loop exit
PB: predicated region body
PF: predicated region fallthrough
CT: control target
= control target key end

     0   :  { %12 = vsyncpa [#allocation3], 0  ;;  %s723_s0 = inlined_call_operand.hbm [shape: f32[16,32], index: 0, kind: input, shape index: {}]   ;;  %s724_s1 = inlined_call_operand.vmem [shape: f32[32,64], index: 1, kind: input, shape index: {}]   ;;  %s725_s2 = inlined_call_operand.vmem [shape: f32[1,64], index: 2, kind: input, shape index: {}]   ;;  %s726_s3 = inlined_call_operand.vmem [shape: f32[64,64], index: 3, kind: input, shape index: {}]   ;;  %s727_s4 = inlined_call_operand.vmem [shape: f32[1,64], index: 4, kind: input, shape index: {}]   ;;  %s728_s5 = inlined_call_operand.vmem [shape: f32[64,32], index: 5, kind: input, shape index: {}]   ;;  %s729_s6 = inlined_call_operand.vmem [shape: f32[1,32], index: 6, kind: input, shape index: {}]   ;;  %s730_s7 = inlined_call_operand.hbm [shape: f32[16,32], index: 7, kind: output, shape index: {}]  }
   0x1   :  { %13 = vsyncpa [#allocation4], 0  ;;  %s570_s24 = smov [#allocation2]   ;;  %s522_s28 = scalar_lea.hbm %s723_s0, 256 }
   0x2   :  { %s19_s25 = sshll.u32 %s570_s24, 4  ;;  %p523_p0 = scmp.ne.s32.totalorder %s723_s0, %s522_s28  ;;  %s20_s25 = int_to_ptr.vmem [resolvable:$true] %s19_s25 }
   0x3   :  { %p526_p1 = scmp.lt.u32.totalorder %s522_s28, %s723_s0 }
   0x5   :  { %p528_p2 = pnand %p526_p1, %p523_p0 }
   0x7   :  { %531 = shalt.err (!%p528_p2)
}
   0x8   :  { %s532_s10 = scalar_lea.vmem %s20_s25, 256  ;;  %p537_p4 = scmp.lt.s32.totalorder %s20_s25, %s20_s25 }
   0x9   :  { %p533_p3 = scmp.ne.s32.totalorder %s20_s25, %s532_s10  ;;  %p538_p5 = scmp.lt.s32.totalorder %s532_s10, %s532_s10 }
   0xb   :  { %p539_p6 = por %p538_p5, %p537_p4 }
   0xd   :  { %p540_p7 = pnand %p539_p6, %p533_p3 }
   0xf   :  { %543 = shalt.err (!%p540_p7)
}
  0x10   :  { %s571_s11 = smov 128   ;;  %s572_s12 = smov 8  }
  0x11   :  { %25 = dma.hbm_to_vmem [thread:$0]  %s723_s0, 256, %s20_s25, [#allocation3], %s571_s11, %s571_s11, %s572_s12  }
  0x12   :  { %566 = dma.done.wait [#allocation3], 256  }
  0x13   :  { %567 = vsyncadd [#allocation3], 4294967040  ;;  %vm54_vm0 = vcmask 261120   ;;  %v43_v0 = vld [vmem:[%s724_s1] sm:$0xff]  ;;  %v44_v1 = vld [vmem:[%s724_s1 + $0x8] sm:$0xff]  ;;  %vm161_vm1 = vcmask 523264  }
  0x14   :  { %v45_v2 = vld [vmem:[%s724_s1 + $0x10] sm:$0xff]  ;;  %v466_v3 = vpack.c.bf16 %v44_v1, %v43_v0  ;;  %v46_v4 = vld [vmem:[%s724_s1 + $0x18] sm:$0xff]  ;;  %v41_v5 = vld [vmem:[#allocation2] sm:$0xff] }
  0x15   :  { %v470_v6 = vpack.c.bf16 %v46_v4, %v45_v2  ;;  %425 = vmatprep.mubr.msk.f32.mxu0 %vm54_vm0, %v41_v5  ;;  %v42_v7 = vld [vmem:[#allocation2 + $0x8] sm:$0xff]  ;;  %v146_v8 = vld [vmem:[%s726_s3] sm:$0xff]  ;;  %v148_v11 = vld [vmem:[%s726_s3 + $0x10] sm:$0xff] }
  0x16   :  { %467 = vmatprep.subr.bf16.mxu0 %v466_v3  ;;  %v147_v9 = vld [vmem:[%s726_s3 + $0x8] sm:$0xff]  ;;  %v149_v12 = vld [vmem:[%s726_s3 + $0x18] sm:$0xff]  ;;  %v150_v14 = vld [vmem:[%s726_s3 + $0x20] sm:$0xff] }
  0x17   :  { %469 = vmatpush3.bf16.msra.mxu0 %v466_v3  ;;  %v474_v10 = vpack.c.bf16 %v147_v9, %v146_v8  ;;  %v478_v13 = vpack.c.bf16 %v149_v12, %v148_v11  ;;  %v151_v15 = vld [vmem:[%s726_s3 + $0x28] sm:$0xff]  ;;  %v152_v17 = vld [vmem:[%s726_s3 + $0x30] sm:$0xff]  ;;  %v153_v18 = vld [vmem:[%s726_s3 + $0x38] sm:$0xff] }
  0x18   :  { %471 = vmatprep.subr.bf16.mxu0 %v470_v6  ;;  %v482_v16 = vpack.c.bf16 %v151_v15, %v150_v14  ;;  %v486_v19 = vpack.c.bf16 %v153_v18, %v152_v17  ;;  %v382_v20 = vld [vmem:[%s725_s2] ss:$0 sm:$0xff]  ;;  %v254_v36 = vld [vmem:[%s728_s5 + $0x8] sm:$0xff]  ;;  %v255_v38 = vld [vmem:[%s728_s5 + $0x10] sm:$0xff] }
  0x19   :  { %475 = vmatprep.subr.bf16.mxu1 %v474_v10  ;;  %v253_v35 = vld [vmem:[%s728_s5] sm:$0xff]  ;;  %v256_v39 = vld [vmem:[%s728_s5 + $0x18] sm:$0xff]  ;;  %v258_v42 = vld [vmem:[%s728_s5 + $0x28] sm:$0xff] }
  0x1a   :  { %477 = vmatpush3.bf16.msra.mxu1 %v474_v10  ;;  %v490_v37 = vpack.c.bf16 %v254_v36, %v253_v35  ;;  %v494_v40 = vpack.c.bf16 %v256_v39, %v255_v38  ;;  %v257_v41 = vld [vmem:[%s728_s5 + $0x20] sm:$0xff]  ;;  %v259_v44 = vld [vmem:[%s728_s5 + $0x30] sm:$0xff]  ;;  %v260_v45 = vld [vmem:[%s728_s5 + $0x38] sm:$0xff] }
  0x1b   :  { %473 = vmatpush3.bf16.msra.mxu0 %v470_v6  ;;  %479 = vmatprep.subr.bf16.mxu1 %v478_v13  ;;  %v498_v43 = vpack.c.bf16 %v258_v42, %v257_v41  ;;  %v502_v46 = vpack.c.bf16 %v260_v45, %v259_v44  ;;  %v385_v47 = vld [vmem:[%s727_s4] ss:$0 sm:$0xff] }
  0x1c   :  { %491 = vmatprep.subr.bf16.mxu0 %v490_v37  ;;  %v388_v62 = vld [vmem:[%s729_s6] ss:$0 sm:$0xff]  ;;  %s573_s6 = smov [#allocation5]  }
  0x1d   :  { %s370_s9 = sshll.u32 %s573_s6, 4  ;;  %s371_s9 = int_to_ptr.vmem [resolvable:$true] %s370_s9 }
  0x1e   :  { %426 = vmatmul.mubr.msk.f32.vlgmr.msra.gmra.mrb[0].mxu0 %vm54_vm0, %v42_v7  ;;  %481 = vmatpush3.bf16.msra.mxu1 %v478_v13  ;;  %s544_s10 = scalar_lea.vmem %s371_s9, 256  ;;  %p549_p9 = scmp.lt.s32.totalorder %s371_s9, %s371_s9 }
  0x1f   :  { %483 = vmatprep.subr.bf16.mxu1 %v482_v16  ;;  %493 = vmatpush3.bf16.msra.mxu0 %v490_v37  ;;  %p545_p8 = scmp.ne.s32.totalorder %s371_s9, %s544_s10  ;;  %p550_p10 = scmp.lt.s32.totalorder %s544_s10, %s544_s10 }
  0x20   :  { %495 = vmatprep.subr.bf16.mxu0 %v494_v40 }
  0x21   :  { %p551_p11 = por %p550_p10, %p549_p9 }
  0x22   :  { %485 = vmatpush3.bf16.msra.mxu1 %v482_v16 }
  0x23   :  { %487 = vmatprep.subr.bf16.mxu1 %v486_v19  ;;  %497 = vmatpush3.bf16.msra.mxu0 %v494_v40  ;;  %p552_p12 = pnand %p551_p11, %p545_p8 }
  0x24   :  { %499 = vmatprep.subr.bf16.mxu0 %v498_v43 }
  0x26   :  { %489 = vmatpush3.bf16.msra.mxu1 %v486_v19 }
  0x27   :  { %501 = vmatpush3.bf16.msra.mxu0 %v498_v43 }
  0x28   :  { %503 = vmatprep.subr.bf16.mxu0 %v502_v46 }
  0x2b   :  { %505 = vmatpush3.bf16.msra.mxu0 %v502_v46 }
  0xf1   :  { %v427_v21 = vpop.f32.mrb[0].mxu0 }
  0xf2   :  { %v133_v22 = vadd.f32 %v427_v21, %v382_v20  ;;  %v127_v23 = vpop.f32.mrb[1].mxu0 }
  0xf3   :  { %v128_v24 = vadd.f32 %v382_v20, %v127_v23 }
  0xf4   :  { %v139_v25 = vmul.f32 0.70710677, %v133_v22  ;;  %v137_v32 = vmul.f32 0.5, %v133_v22 }
  0xf5   :  { %v138_v26 = vmul.f32 0.70710677, %v128_v24  ;;  %v136_v30 = vmul.f32 0.5, %v128_v24 }
  0xf6   :  { %510 = verf.f32 %v139_v25 }
  0xf7   :  { %512 = verf.f32 %v138_v26 }
 0x100   :  { %v511_v27 = vpop.eup %510 }
 0x101   :  { %v513_v28 = vpop.eup %512  ;;  %v143_v29 = vadd.f32 1.0, %v511_v27 }
 0x102   :  { %v142_v31 = vadd.f32 1.0, %v513_v28 }
 0x103   :  { %v145_v34 = vmul.f32 %v143_v29, %v137_v32 }
 0x104   :  { %v144_v33 = vmul.f32 %v142_v31, %v136_v30 }
 0x106   :  { %444 = vmatprep.mubr.msk.f32.mxu1 %vm161_vm1, %v144_v33 }
 0x107   :  { %445 = vmatmul.mubr.msk.f32.vlgmr.msra.gmra.mrb[0].mxu1 %vm161_vm1, %v145_v34 }
 0x1da   :  { %v446_v48 = vpop.f32.mrb[0].mxu1 }
 0x1db   :  { %v240_v49 = vadd.f32 %v446_v48, %v385_v47  ;;  %v234_v50 = vpop.f32.mrb[1].mxu1 }
 0x1dc   :  { %v235_v51 = vadd.f32 %v385_v47, %v234_v50 }
 0x1dd   :  { %v246_v52 = vmul.f32 0.70710677, %v240_v49  ;;  %v244_v59 = vmul.f32 0.5, %v240_v49 }
 0x1de   :  { %v245_v53 = vmul.f32 0.70710677, %v235_v51  ;;  %v243_v57 = vmul.f32 0.5, %v235_v51 }
 0x1df   :  { %514 = verf.f32 %v246_v52 }
 0x1e0   :  { %516 = verf.f32 %v245_v53 }
 0x1e9   :  { %v515_v54 = vpop.eup %514 }
 0x1ea   :  { %v517_v55 = vpop.eup %516  ;;  %v250_v56 = vadd.f32 1.0, %v515_v54 }
 0x1eb   :  { %v249_v58 = vadd.f32 1.0, %v517_v55 }
 0x1ec   :  { %v252_v61 = vmul.f32 %v250_v56, %v244_v59 }
 0x1ed   :  { %v251_v60 = vmul.f32 %v249_v58, %v243_v57 }
 0x1ef   :  { %463 = vmatprep.mubr.msk.f32.mxu0 %vm161_vm1, %v251_v60 }
 0x1f0   :  { %464 = vmatmul.mubr.msk.f32.vlgmr.msra.gmra.mrb[2].mxu0 %vm161_vm1, %v252_v61 }
 0x2c3   :  { %v465_v63 = vpop.f32.mrb[2].mxu0 }
 0x2c4   :  { %v340_v0 = vpop.f32.mrb[3].mxu0  ;;  %v346_v1 = vadd.f32 %v465_v63, %v388_v62 }
 0x2c5   :  { %v341_v2 = vadd.f32 %v388_v62, %v340_v0 }
 0x2c6   :  { %v350_v5 = vmul.f32 %v346_v1, %v346_v1 }
 0x2c7   :  { %v349_v3 = vmul.f32 %v341_v2, %v341_v2 }
 0x2c8   :  { %v354_v6 = vsel %vm54_vm0, %v350_v5, 0.0 }
 0x2c9   :  { %v351_v4 = vsel %vm54_vm0, %v349_v3, 0.0 }
 0x2ca   :  { %352 = vadd.xlane.f32.xlu0 %v351_v4 }
 0x2ce   :  { %355 = vadd.xlane.f32.xlu0 %v354_v6 }
 0x357   :  { %v353_v7 = vpop.xlane.xlu0 %352 }
 0x358   :  { %v357_v8 = vmax.f32 %v353_v7, 1e-24 }
 0x35a   :  { %518 = vrsqrt.f32 %v357_v8 }
 0x35b   :  { %v356_v9 = vpop.xlane.xlu0 %355 }
 0x35c   :  { %v358_v10 = vmax.f32 %v356_v9, 1e-24 }
 0x35e   :  { %520 = vrsqrt.f32 %v358_v10 }
 0x364   :  { %v519_v11 = vpop.eup %518 }
 0x365   :  { %v361_v12 = vmul.f32 %v519_v11, %v341_v2 }
 0x367   :  { %363 = vst.msk [vmem:[#allocation5] sm:$0xff] %vm54_vm0, %v361_v12 }
 0x368   :  { %v521_v13 = vpop.eup %520 }
 0x369   :  { %v362_v14 = vmul.f32 %v521_v13, %v346_v1 }
 0x36b   :  { %364 = vst.msk [vmem:[#allocation5 + $0x8] sm:$0xff] %vm54_vm0, %v362_v14 }
 0x36c   :  { %555 = shalt.err (!%p552_p12)
}
 0x36d   :  { %s556_s15 = scalar_lea.hbm %s730_s7, 256 }
 0x36e   :  { %p557_p13 = scmp.ne.s32.totalorder %s730_s7, %s556_s15  ;;  %p560_p0 = scmp.lt.u32.totalorder %s556_s15, %s730_s7 }
 0x370   :  { %p562_p1 = pnand %p560_p0, %p557_p13 }
 0x372   :  { %565 = shalt.err (!%p562_p1)
}
 0x373   :  { %376 = dma.vmem_to_hbm [thread:$0]  %s371_s9, 256, %s730_s7, [#allocation4], %s571_s11, %s571_s11, %s572_s12  }
 0x374   :  { %568 = dma.done.wait [#allocation4], 256  }
 0x375   :  { %569 = vsyncadd [#allocation4], 4294967040 }
 0x376   :  { %380 = vsyncpa [#allocation3], 1 }
 0x377   :  { %381 = vsyncpa [#allocation4], 1 }

</bundles_post_ra>
